<compile_context>
chip_gen: v7x
topology: tpu7x:2x2x1
jax: 0.10.0
libtpu: 0.0.40
codegen_flags: <defaults>
</compile_context>

<pallas_src>
import jax
import jax.numpy as jnp
from jax.experimental import pallas as pl
from jax.experimental.pallas import tpu as pltpu

HIDDEN_SIZE = 256   # `hidden_size = 256` in the original file
SEQ_LEN = 8
BATCH = 16
BATCH_TILE = 8      # rows of `hidden` processed per grid step (sublane-aligned)


def _attn_kernel(h_ref, enc_ref, wa_ref, ba_ref, out_ref):
    """One batch tile of attention weights.

    h_ref   : (TB, H)    f32   decoder hidden states (the "query" s_i)
    enc_ref : (TB, S, H) f32   encoder outputs
    wa_ref  : (H, H)     bf16  nn.Linear weight, torch (out, in) layout
    ba_ref  : (1, H)     f32   nn.Linear bias
    out_ref : (TB, S)    f32   softmax(scores) over the sequence axis
    """
    h = h_ref[...]                                     # (TB, H)  f32
    enc = enc_ref[...]                                 # (TB, S, H) f32

    # V = hidden @ W  on the MXU (bf16 operands, f32 accumulation).
    # With W stored in torch (out,in) layout no transpose is needed:
    #   scores[b,s] = sum_j enc[b,s,j] * (hidden @ W)[b,j] + hidden[b].b
    v = jnp.dot(h.astype(jnp.bfloat16), wa_ref[...],
                preferred_element_type=jnp.float32)    # (TB, H) f32

    # Bias term is constant along the sequence axis (softmax shift-invariant),
    # kept for fidelity with the torch math; f32 on the VPU.
    c = jnp.sum(h * ba_ref[...], axis=-1, keepdims=True)          # (TB, 1)

    scores = jnp.sum(enc * v[:, None, :], axis=-1) + c            # (TB, S)

    # Softmax over the sequence axis (dim=1 of the torch (B, S) tensor), f32.
    m = jnp.max(scores, axis=-1, keepdims=True)
    e = jnp.exp(scores - m)
    out_ref[...] = e / jnp.sum(e, axis=-1, keepdims=True)


@jax.jit
def attn_forward(hidden, encoder_outputs, params):
    """Mirrors Attn.forward(hidden, encoder_outputs) -> (B, 1, S) attention weights."""
    B, S, H = encoder_outputs.shape
    assert hidden.shape == (B, H)
    tb = min(BATCH_TILE, B)
    assert B % tb == 0

    # bf16 weight halves the dominant HBM bytes and hits the MXU's native path.
    w_bf16 = params["w_attn"].astype(jnp.bfloat16)     # (H, H) torch (out, in) layout
    b_attn = params["b_attn"].reshape(1, H)            # (1, H) f32

    attn = pl.pallas_call(
        _attn_kernel,
        grid=(B // tb,),
        in_specs=[
            pl.BlockSpec((tb, H), lambda i: (i, 0)),          # hidden tile
            pl.BlockSpec((tb, S, H), lambda i: (i, 0, 0)),    # encoder_outputs tile
            # Constant block index => weight/bias are DMA'd once and stay
            # VMEM-resident across all grid steps (batch / decode-step amortization).
            pl.BlockSpec((H, H), lambda i: (0, 0)),
            pl.BlockSpec((1, H), lambda i: (0, 0)),
        ],
        out_specs=pl.BlockSpec((tb, S), lambda i: (i, 0)),
        out_shape=jax.ShapeDtypeStruct((B, S), jnp.float32),
        compiler_params=pltpu.CompilerParams(
            dimension_semantics=("arbitrary",)),
    )(hidden, encoder_outputs, w_bf16, b_attn)

    return attn[:, None, :]          # == F.softmax(scores, dim=1).unsqueeze(1)


def _ref_forward(hidden, encoder_outputs, params):
    """Pure-JAX reference of the original (un-refactored) Attn math.

    The same bf16 quantization of the matmul operands (W, hidden) the kernel uses
    is applied here so the comparison can be tight; everything else is f32.
    """
    wq = params["w_attn"].astype(jnp.bfloat16).astype(jnp.float32)
    hq = hidden.astype(jnp.bfloat16).astype(jnp.float32)
    energy = jnp.einsum("bsh,oh->bso", encoder_outputs, wq,
                        precision=jax.lax.Precision.HIGHEST) + params["b_attn"]
    scores = jnp.einsum("bso,bo->bs", energy, hq,
                        precision=jax.lax.Precision.HIGHEST)
    return jax.nn.softmax(scores, axis=-1)[:, None, :]


def init_params(key, hidden_size):
    """nn.Linear(H, H) parameters in torch layout: weight (out, in), bias (out,)."""
    H = hidden_size
    kw, kb = jax.random.split(key)
    lim = 1.0 / (H ** 0.5)
    return {
        "w_attn": jax.random.uniform(kw, (H, H), jnp.float32, -lim, lim),
        "b_attn": jax.random.uniform(kb, (H,), jnp.float32, -lim, lim),
    }


if __name__ == "__main__":
    key = jax.random.PRNGKey(0)
    k_par, k_hid, k_enc = jax.random.split(key, 3)

    H, S, B = HIDDEN_SIZE, SEQ_LEN, BATCH
    params = init_params(k_par, H)
    hidden = jax.random.normal(k_hid, (B, H), jnp.float32)              # (B, H)
    encoder_outputs = jax.random.normal(k_enc, (B, S, H), jnp.float32)  # (B, S, H)

    attn = attn_forward(hidden, encoder_outputs, params)
    jax.block_until_ready(attn)

    ref = _ref_forward(hidden, encoder_outputs, params)
    assert attn.shape == (B, 1, S)
    assert bool(jnp.allclose(jnp.sum(attn, axis=-1), 1.0, atol=1e-5))
    assert bool(jnp.allclose(attn, ref, atol=2e-3, rtol=2e-3))

    print("KERNEL_OK")
</pallas_src>

<mosaic_0001>
module attributes {stable_mosaic.version = 11 : i64} {
  func.func @_attn_kernel(%arg0: i32, %arg1: memref<8x256xf32, #tpu.memory_space<vmem>>, %arg2: memref<8x8x256xf32, #tpu.memory_space<vmem>>, %arg3: memref<256x256xbf16, #tpu.memory_space<vmem>>, %arg4: memref<1x256xf32, #tpu.memory_space<vmem>>, %arg5: memref<8x8xf32, #tpu.memory_space<vmem>>) attributes {dimension_semantics = [#tpu.dimension_semantics<arbitrary>], iteration_bounds = array<i64: 2>, scalar_prefetch = 0 : i64, scratch_operands = 0 : i64, tpu.core_type = #tpu.core_type<tc>, window_params = [{transform_indices = @transform_0, window_bounds = array<i64: 8, 256>}, {transform_indices = @transform_1, window_bounds = array<i64: 8, 8, 256>}, {pipeline_mode = #tpu.pipeline_mode<synchronous>, transform_indices = @transform_2, window_bounds = array<i64: 256, 256>}, {pipeline_mode = #tpu.pipeline_mode<synchronous>, transform_indices = @transform_3, window_bounds = array<i64: 1, 256>}, {transform_indices = @transform_4, window_bounds = array<i64: 8, 8>}]} {
    %c0 = arith.constant 0 : index
    %c0_0 = arith.constant 0 : index
    %0 = vector.load %arg1[%c0, %c0_0] : memref<8x256xf32, #tpu.memory_space<vmem>>, vector<8x256xf32>
    %c0_1 = arith.constant 0 : index
    %c0_2 = arith.constant 0 : index
    %c0_3 = arith.constant 0 : index
    %1 = vector.load %arg2[%c0_1, %c0_2, %c0_3] : memref<8x8x256xf32, #tpu.memory_space<vmem>>, vector<8x8x256xf32>
    %2 = arith.truncf %0 : vector<8x256xf32> to vector<8x256xbf16>
    %c0_4 = arith.constant 0 : index
    %c0_5 = arith.constant 0 : index
    %3 = vector.load %arg3[%c0_4, %c0_5] : memref<256x256xbf16, #tpu.memory_space<vmem>>, vector<256x256xbf16>
    %cst = arith.constant dense<0.000000e+00> : vector<8x256xf32>
    %4 = tpu.matmul %2, %3, %cst {dimension_numbers = #tpu.dot_dimension_numbers<[1], [0], [0], [1], [0, 0, 1, 1], [], []>} : vector<8x256xbf16>, vector<256x256xbf16>, vector<8x256xf32> -> vector<8x256xf32>
    %c0_6 = arith.constant 0 : index
    %c0_7 = arith.constant 0 : index
    %5 = vector.load %arg4[%c0_6, %c0_7] : memref<1x256xf32, #tpu.memory_space<vmem>>, vector<1x256xf32>
    %6 = vector.broadcast %5 : vector<1x256xf32> to vector<8x256xf32>
    %7 = arith.mulf %0, %6 : vector<8x256xf32>
    %cst_8 = arith.constant dense<0.000000e+00> : vector<8xf32>
    %8 = vector.multi_reduction <add>, %7, %cst_8 [1] : vector<8x256xf32> to vector<8xf32>
    %9 = vector.shape_cast %8 : vector<8xf32> to vector<8x1xf32>
    %10 = vector.shape_cast %4 : vector<8x256xf32> to vector<8x1x256xf32>
    %11 = vector.broadcast %10 : vector<8x1x256xf32> to vector<8x8x256xf32>
    %12 = arith.mulf %1, %11 : vector<8x8x256xf32>
    %cst_9 = arith.constant dense<0.000000e+00> : vector<8x8xf32>
    %13 = vector.multi_reduction <add>, %12, %cst_9 [2] : vector<8x8x256xf32> to vector<8x8xf32>
    %14 = vector.broadcast %9 : vector<8x1xf32> to vector<8x8xf32>
    %15 = arith.addf %13, %14 : vector<8x8xf32>
    %cst_10 = arith.constant dense<0xFF800000> : vector<8xf32>
    %16 = vector.multi_reduction <maximumf>, %15, %cst_10 [1] : vector<8x8xf32> to vector<8xf32>
    %17 = vector.shape_cast %16 : vector<8xf32> to vector<8x1xf32>
    %18 = vector.broadcast %17 : vector<8x1xf32> to vector<8x8xf32>
    %19 = arith.subf %15, %18 : vector<8x8xf32>
    %20 = math.exp %19 : vector<8x8xf32>
    %cst_11 = arith.constant dense<0.000000e+00> : vector<8xf32>
    %21 = vector.multi_reduction <add>, %20, %cst_11 [1] : vector<8x8xf32> to vector<8xf32>
    %22 = vector.shape_cast %21 : vector<8xf32> to vector<8x1xf32>
    %23 = vector.broadcast %22 : vector<8x1xf32> to vector<8x8xf32>
    %24 = arith.divf %20, %23 : vector<8x8xf32>
    %c0_12 = arith.constant 0 : index
    %c0_13 = arith.constant 0 : index
    %25 = vector.load %arg5[%c0_12, %c0_13] : memref<8x8xf32, #tpu.memory_space<vmem>>, vector<8x8xf32>
    tpu.vector_store %arg5[%c0_12, %c0_13], %24 {strides = array<i32>} : memref<8x8xf32, #tpu.memory_space<vmem>>, vector<8x8xf32>,
    return
  }
  func.func @transform_0(%arg0: i32) -> (i32, i32) {
    %c0_i32 = arith.constant 0 : i32
    %c0_i32_0 = arith.constant 0 : i32
    return %arg0, %c0_i32 : i32, i32
  }
  func.func @transform_1(%arg0: i32) -> (i32, i32, i32) {
    %c0_i32 = arith.constant 0 : i32
    %c0_i32_0 = arith.constant 0 : i32
    %c0_i32_1 = arith.constant 0 : i32
    return %arg0, %c0_i32, %c0_i32_0 : i32, i32, i32
  }
  func.func @transform_2(%arg0: i32) -> (i32, i32) {
    %c0_i32 = arith.constant 0 : i32
    %c0_i32_0 = arith.constant 0 : i32
    %c0_i32_1 = arith.constant 0 : i32
    return %c0_i32, %c0_i32_0 : i32, i32
  }
  func.func @transform_3(%arg0: i32) -> (i32, i32) {
    %c0_i32 = arith.constant 0 : i32
    %c0_i32_0 = arith.constant 0 : i32
    %c0_i32_1 = arith.constant 0 : i32
    return %c0_i32, %c0_i32_0 : i32, i32
  }
  func.func @transform_4(%arg0: i32) -> (i32, i32) {
    %c0_i32 = arith.constant 0 : i32
    %c0_i32_0 = arith.constant 0 : i32
    return %arg0, %c0_i32 : i32, i32
  }
}

</mosaic_0001>

<bundles_post_ra>
// kernel: attn_forward.1
= control target key start
LH: loop header
LB: loop body
LE: loop exit
PB: predicated region body
PF: predicated region fallthrough
CT: control target
= control target key end

     0   :  { %s1306_s15 = smov 0   ;;  %s1634_s0 = inlined_call_operand.vmem [shape: f32[16,256], index: 0, kind: input, shape index: {}]   ;;  %s1635_s1 = inlined_call_operand.vmem [shape: f32[16,8,256], index: 1, kind: input, shape index: {}]   ;;  %s1636_s2 = inlined_call_operand.vmem [shape: bf16[256,256], index: 2, kind: input, shape index: {}]   ;;  %s1637_s3 = inlined_call_operand.vmem [shape: f32[1,256], index: 3, kind: input, shape index: {}]   ;;  %s1638_s4 = inlined_call_operand.vmem [shape: f32[16,8], index: 4, kind: output, shape index: {}]  }
   0x1 LB: > { %s1312_s16 = sadd.s32 4294967295, %s1277_s15   ;;  %p1136_p0 = scmp.ge.s32.totalorder %s1277_s15, 1  ;;  %s1277_s15 = sphi %s1306_s15, %s14_s15  }
   0x2   : > { %p174_p1 = scmp.lt.s32.totalorder %s1277_s15, 3 }
   0x4   : > { %p175_p2 = pnand %p1136_p0, %p174_p1 }
   0x5   : > { %v1191_v0 = vld [vmem:[%s1636_s2 + $0x4] ss:$8 sps:$4 sm:$0xff] (!%p175_p2)   ;;  %v1193_v1 = vld [vmem:[%s1636_s2] ss:$8 sps:$4 sm:$0xff] (!%p175_p2)   ;;  %v1194_v2 = vld [vmem:[%s1636_s2 + $0x14] ss:$8 sps:$4 sm:$0xff] (!%p175_p2)   ;;  %v476_v36 = vlaneseq (!%p175_p2) }
   0x6   : > { %178 = sbr.rel (%p175_p2) target bundleno = 1225 (0x4c9), region = 36  ;;  %433 = vmatprep.subr.bf16.mxu0 (!%p175_p2), %v1191_v0  ;;  %v1196_v3 = vld [vmem:[%s1636_s2 + $0x10] ss:$8 sps:$4 sm:$0xff] (!%p175_p2)   ;;  %v1197_v4 = vld [vmem:[%s1636_s2 + $0x24] ss:$8 sps:$4 sm:$0xff] (!%p175_p2)   ;;  %p205_p3 = scmp.lt.s32.totalorder (!%p175_p2), %s1312_s16, 1 }
   0x7   : > { %434 = vmatpush1.bf16.msra.mxu0 (!%p175_p2), %v1193_v1  ;;  %v1199_v5 = vld [vmem:[%s1636_s2 + $0x20] ss:$8 sps:$4 sm:$0xff] (!%p175_p2)   ;;  %v1200_v6 = vld [vmem:[%s1636_s2 + $0x34] ss:$8 sps:$4 sm:$0xff] (!%p175_p2)   ;;  %v1202_v7 = vld [vmem:[%s1636_s2 + $0x30] ss:$8 sps:$4 sm:$0xff] (!%p175_p2)  }
   0x8   : > { %435 = vmatprep.subr.bf16.mxu0 (!%p175_p2), %v1194_v2  ;;  %v1203_v8 = vld [vmem:[%s1636_s2 + $0x44] ss:$8 sps:$4 sm:$0xff] (!%p175_p2)   ;;  %v1205_v9 = vld [vmem:[%s1636_s2 + $0x40] ss:$8 sps:$4 sm:$0xff] (!%p175_p2)   ;;  %v1206_v10 = vld [vmem:[%s1636_s2 + $0x54] ss:$8 sps:$4 sm:$0xff] (!%p175_p2)  }
   0x9   : > { %v1208_v11 = vld [vmem:[%s1636_s2 + $0x50] ss:$8 sps:$4 sm:$0xff] (!%p175_p2)   ;;  %v1209_v12 = vld [vmem:[%s1636_s2 + $0x64] ss:$8 sps:$4 sm:$0xff] (!%p175_p2)   ;;  %v1211_v15 = vld [vmem:[%s1636_s2 + $0x60] ss:$8 sps:$4 sm:$0xff] (!%p175_p2)  }
   0xa   : > { %v1212_v16 = vld [vmem:[%s1636_s2 + $0x74] ss:$8 sps:$4 sm:$0xff] (!%p175_p2)   ;;  %v1214_v17 = vld [vmem:[%s1636_s2 + $0x70] ss:$8 sps:$4 sm:$0xff] (!%p175_p2)   ;;  %v1215_v18 = vld [vmem:[%s1636_s2 + $0x84] ss:$8 sps:$4 sm:$0xff] (!%p175_p2)  }
   0xb   : > { %436 = vmatpush1.bf16.msra.mxu0 (!%p175_p2), %v1196_v3  ;;  %v1217_v19 = vld [vmem:[%s1636_s2 + $0x80] ss:$8 sps:$4 sm:$0xff] (!%p175_p2)   ;;  %v1218_v20 = vld [vmem:[%s1636_s2 + $0x94] ss:$8 sps:$4 sm:$0xff] (!%p175_p2)   ;;  %v1220_v21 = vld [vmem:[%s1636_s2 + $0x90] ss:$8 sps:$4 sm:$0xff] (!%p175_p2)  }
   0xc   : > { %437 = vmatprep.subr.bf16.mxu0 (!%p175_p2), %v1197_v4  ;;  %v1221_v22 = vld [vmem:[%s1636_s2 + $0xa4] ss:$8 sps:$4 sm:$0xff] (!%p175_p2)   ;;  %v1223_v23 = vld [vmem:[%s1636_s2 + $0xa0] ss:$8 sps:$4 sm:$0xff] (!%p175_p2)   ;;  %v1224_v24 = vld [vmem:[%s1636_s2 + $0xb4] ss:$8 sps:$4 sm:$0xff] (!%p175_p2)  }
   0xd   : > { %s1342_s7 = scalar_select %p205_p3, %s1312_s16, 1  ;;  %v1226_v25 = vld [vmem:[%s1636_s2 + $0xb0] ss:$8 sps:$4 sm:$0xff]   ;;  %v1227_v26 = vld [vmem:[%s1636_s2 + $0xc4] ss:$8 sps:$4 sm:$0xff]   ;;  %v1425_v37 = vshrl.u32 %v476_v36, 7 }
   0xe   : > { %v1229_v27 = vld [vmem:[%s1636_s2 + $0xc0] ss:$8 sps:$4 sm:$0xff]   ;;  %v1230_v28 = vld [vmem:[%s1636_s2 + $0xd4] ss:$8 sps:$4 sm:$0xff]   ;;  %v1232_v29 = vld [vmem:[%s1636_s2 + $0xd0] ss:$8 sps:$4 sm:$0xff]  }
   0xf   : > { %438 = vmatpush1.bf16.msra.mxu0 %v1199_v5  ;;  %s1177_s12 = sshll.u32 %s1342_s7, 4  ;;  %v1233_v30 = vld [vmem:[%s1636_s2 + $0xe4] ss:$8 sps:$4 sm:$0xff]   ;;  %v1235_v31 = vld [vmem:[%s1636_s2 + $0xe0] ss:$8 sps:$4 sm:$0xff]   ;;  %v1428_v38 = vsub.s32 0, %v1425_v37 }
  0x10   : > { %439 = vmatprep.subr.bf16.mxu0 %v1200_v6  ;;  %s1357_s19 = scalar_lea.vmem %s1634_s0, %s1177_s12  ;;  %v1236_v32 = vld [vmem:[%s1636_s2 + $0xf4] ss:$8 sps:$4 sm:$0xff]   ;;  %v1238_v33 = vld [vmem:[%s1636_s2 + $0xf0] ss:$8 sps:$4 sm:$0xff]   ;;  %v1431_v39 = vsub.s32 1, %v1425_v37  ;;  %vm778_vm0 = vcmask 1041409  }
  0x11   : > { %v222_v13 = vld [vmem:[%s1357_s19 + $0x8] sm:$0xff]  ;;  %v221_v34 = vld [vmem:[%s1357_s19] sm:$0xff]  ;;  %s1139_s19 = sshll.u32 %s1312_s16, 3  ;;  %v1279_v46 = vmov 1966171168   ;;  %vm780_vm1 = vcmask 1042434  }
  0x12   : > { %v240_v14 = vpack.c.bf16 %v222_v13, %v222_v13  ;;  %v239_v35 = vpack.c.bf16 %v221_v34, %v221_v34  ;;  %v474_v40 = vld [vmem:[%s1637_s3] sm:$0x3]  ;;  %v496_v47 = vunpack.c.l.s4 %v1279_v46  ;;  %p211_p4 = scmp.lt.s32.totalorder %s1139_s19, 15  ;;  %vm782_vm2 = vcmask 1043459   ;;  %s1142_s23 = sshll.u32 %s1342_s7, 3 }
  0x13   : > { %440 = vmatpush1.bf16.msra.mxu0 %v1202_v7  ;;  %v479_v41 = vrot.slane %v474_v40, %v1428_v38  ;;  %v483_v42 = vrot.slane %v474_v40, %v1431_v39  ;;  %vm784_vm3 = vcmask 1044484   ;;  %vm786_vm4 = vcmask 1045509   ;;  %s220_s26 = scalar_lea.vmem %s1638_s4, %s1142_s23 }
  0x14   : > { %441 = vmatprep.subr.bf16.mxu0 %v1203_v8  ;;  %465 = vmatprep.mubr.bf16.mxu0 %v240_v14  ;;  %v497_v48 = vunpack.c.0.s8 %v496_v47  ;;  %s1640_s19 = smov (!%p211_p4, %s1139_s19), 15  ;;  %vm788_vm5 = vcmask 1046534   ;;  %vm790_vm6 = vcmask 1047559   ;;  %vm793_vm7 = vcmask 64512  }
  0x15   : > { %v486_v43 = vmul.f32 %v479_v41, %v221_v34  ;;  %v487_v44 = vmul.f32 %v483_v42, %v222_v13  ;;  %s1178_s20 = sshll.u32 %s1640_s19, 4 }
  0x16   : > { %v500_v50 = vsub.s32 %v497_v48, %v1425_v37  ;;  %s1443_s16 = scalar_lea.vmem %s1635_s1, %s1178_s20 }
  0x17   : > { %442 = vmatpush1.bf16.msra.mxu0 %v1205_v9  ;;  %v488_v45 = vadd.f32 %v487_v44, %v486_v43  ;;  %v231_v62 = vld [vmem:[%s1443_s16 + $0x40] sm:$0xff]  ;;  %v232_v63 = vld [vmem:[%s1443_s16 + $0x48] sm:$0xff]  ;;  %v233_v8 = vld [vmem:[%s1443_s16 + $0x50] sm:$0xff] }
  0x18   : > { %443 = vmatprep.subr.bf16.mxu0 %v1206_v10  ;;  %v223_v4 = vld [vmem:[%s1443_s16] sm:$0xff]  ;;  %v224_v5 = vld [vmem:[%s1443_s16 + $0x8] sm:$0xff]  ;;  %v234_v9 = vld [vmem:[%s1443_s16 + $0x58] sm:$0xff] }
  0x19   : > { %489 = vadd.xlane.f32.xlu0 %v488_v45  ;;  %v230_v40 = vld [vmem:[%s1443_s16 + $0x38] sm:$0xff]  ;;  %v235_v48 = vld [vmem:[%s1443_s16 + $0x60] sm:$0xff] }
  0x1b   : > { %444 = vmatpush1.bf16.msra.mxu0 %v1208_v11 }
  0x1c   : > { %445 = vmatprep.subr.bf16.mxu0 %v1209_v12 }
  0x1f   : > { %446 = vmatpush1.bf16.msra.mxu0 %v1211_v15 }
  0x20   : > { %447 = vmatprep.subr.bf16.mxu0 %v1212_v16  ;;  %v225_v16 = vld [vmem:[%s1443_s16 + $0x10] sm:$0xff] }
  0x23   : > { %448 = vmatpush1.bf16.msra.mxu0 %v1214_v17  ;;  %v226_v17 = vld [vmem:[%s1443_s16 + $0x18] sm:$0xff] }
  0x24   : > { %449 = vmatprep.subr.bf16.mxu0 %v1215_v18 }
  0x27   : > { %450 = vmatpush1.bf16.msra.mxu0 %v1217_v19 }
  0x28   : > { %451 = vmatprep.subr.bf16.mxu0 %v1218_v20 }
  0x2b   : > { %452 = vmatpush1.bf16.msra.mxu0 %v1220_v21 }
  0x2c   : > { %453 = vmatprep.subr.bf16.mxu0 %v1221_v22 }
  0x2f   : > { %454 = vmatpush1.bf16.msra.mxu0 %v1223_v23 }
  0x30   : > { %455 = vmatprep.subr.bf16.mxu0 %v1224_v24 }
  0x33   : > { %456 = vmatpush1.bf16.msra.mxu0 %v1226_v25  ;;  %v227_v25 = vld [vmem:[%s1443_s16 + $0x20] sm:$0xff] }
  0x34   : > { %457 = vmatprep.subr.bf16.mxu0 %v1227_v26 }
  0x37   : > { %458 = vmatpush1.bf16.msra.mxu0 %v1229_v27 }
  0x38   : > { %459 = vmatprep.subr.bf16.mxu0 %v1230_v28 }
  0x3b   : > { %460 = vmatpush1.bf16.msra.mxu0 %v1232_v29 }
  0x3c   : > { %461 = vmatprep.subr.bf16.mxu0 %v1233_v30  ;;  %v228_v30 = vld [vmem:[%s1443_s16 + $0x28] sm:$0xff] }
  0x3f   : > { %462 = vmatpush1.bf16.msra.mxu0 %v1235_v31 }
  0x40   : > { %463 = vmatprep.subr.bf16.mxu0 %v1236_v32 }
  0x43   : > { %464 = vmatpush1.bf16.msra.mxu0 %v1238_v33 }
  0x46   : > { %466 = vmatmul.mubr.bf16.vlgmr.msra.gmra.mrb[0].mxu0 %v239_v35  ;;  %v229_v35 = vld [vmem:[%s1443_s16 + $0x30] sm:$0xff] }
 0x119   : > { %v467_v49 = vpop.f32.mrb[0].mxu0 }
 0x11a   : > { %v469_v51 = vpop.f32.mrb[1].mxu0 }
 0x11b   : > { %v493_v52 = vcombine.low %v467_v49, %v469_v51  ;;  %v494_v53 = vcombine.high %v467_v49, %v469_v51  ;;  %v471_v54 = vpop.f32.mrb[2].mxu0  ;;  %v236_v49 = vld [vmem:[%s1443_s16 + $0x68] sm:$0xff] }
 0x11c   : > { %v472_v55 = vpop.f32.mrb[3].mxu0  ;;  %v237_v54 = vld [vmem:[%s1443_s16 + $0x70] sm:$0xff] }
 0x11d   : > { %v501_v56 = vrot.slane %v493_v52, %v500_v50  ;;  %v508_v57 = vrot.slane %v494_v53, %v500_v50  ;;  %v238_v55 = vld [vmem:[%s1443_s16 + $0x78] sm:$0xff] }
 0x11f   : > { %v509_v58 = vcombine.high %v501_v56, %v501_v56  ;;  %v510_v59 = vcombine.high %v508_v57, %v508_v57  ;;  %v517_v60 = vrot.slane %v501_v56, %v500_v50  ;;  %v524_v61 = vrot.slane %v508_v57, %v500_v50 }
 0x121   : > { %v531_v0 = vrot.slane %v509_v58, %v500_v50  ;;  %v538_v1 = vrot.slane %v510_v59, %v500_v50  ;;  %v578_v2 = vrot.slane %v524_v61, %v1428_v38  ;;  %v582_v3 = vrot.slane %v524_v61, %v1431_v39 }
 0x122   : > { %v546_v6 = vrot.slane %v517_v60, %v1428_v38  ;;  %v550_v7 = vrot.slane %v517_v60, %v1431_v39  ;;  %v539_v10 = vcombine.high %v517_v60, %v517_v60  ;;  %v540_v11 = vcombine.high %v524_v61, %v524_v61 }
 0x123   : > { %v631_v12 = vmul.f32 %v578_v2, %v231_v62  ;;  %v632_v13 = vmul.f32 %v582_v3, %v232_v63  ;;  %v586_v14 = vrot.slane %v538_v1, %v1428_v38  ;;  %v590_v15 = vrot.slane %v538_v1, %v1431_v39 }
 0x124   : > { %v623_v18 = vmul.f32 %v546_v6, %v223_v4  ;;  %v624_v19 = vmul.f32 %v550_v7, %v224_v5  ;;  %v554_v20 = vrot.slane %v531_v0, %v1428_v38  ;;  %v558_v21 = vrot.slane %v531_v0, %v1431_v39 }
 0x125   : > { %v651_v22 = vadd.f32 %v632_v13, %v631_v12  ;;  %v633_v23 = vmul.f32 %v586_v14, %v233_v8  ;;  %v634_v24 = vmul.f32 %v590_v15, %v234_v9  ;;  %v562_v26 = vrot.slane %v539_v10, %v1428_v38 }
 0x126   : > { %v639_v27 = vadd.f32 %v624_v19, %v623_v18  ;;  %v625_v28 = vmul.f32 %v554_v20, %v225_v16  ;;  %v626_v29 = vmul.f32 %v558_v21, %v226_v17  ;;  %v566_v31 = vrot.slane %v539_v10, %v1431_v39 }
 0x127   : > { %652 = vadd.xlane.f32.xlu1 %v651_v22  ;;  %v541_v32 = vcombine.high %v531_v0, %v531_v0  ;;  %v627_v34 = vmul.f32 %v562_v26, %v227_v25  ;;  %v594_v41 = vrot.slane %v540_v11, %v1428_v38  ;;  %v542_v42 = vcombine.high %v538_v1, %v538_v1  ;;  %v490_v1 = vpop.xlane.xlu0 %489 }
 0x128   : > { %640 = vadd.xlane.f32.xlu0 %v639_v27  ;;  %v642_v33 = vadd.f32 %v626_v29, %v625_v28  ;;  %v628_v43 = vmul.f32 %v566_v31, %v228_v30  ;;  %v598_v46 = vrot.slane %v540_v11, %v1431_v39  ;;  %v654_v47 = vadd.f32 %v634_v24, %v633_v23 }
 0x129   : > { %v570_v44 = vrot.slane %v541_v32, %v1428_v38  ;;  %v574_v45 = vrot.slane %v541_v32, %v1431_v39  ;;  %v602_v50 = vrot.slane %v542_v42, %v1428_v38  ;;  %v606_v51 = vrot.slane %v542_v42, %v1431_v39 }
 0x12a   : > { %v645_v56 = vadd.f32 %v628_v43, %v627_v34  ;;  %v635_v57 = vmul.f32 %v594_v41, %v235_v48  ;;  %v636_v58 = vmul.f32 %v598_v46, %v236_v49  ;;  %v1280_v0 = vmov 0  }
 0x12b   : > { %643 = vadd.xlane.f32.xlu1 %v642_v33  ;;  %v629_v52 = vmul.f32 %v570_v44, %v229_v35  ;;  %v630_v53 = vmul.f32 %v574_v45, %v230_v40  ;;  %v637_v60 = vmul.f32 %v602_v50, %v237_v54  ;;  %v638_v61 = vmul.f32 %v606_v51, %v238_v55 }
 0x12c   : > { %655 = vadd.xlane.f32.xlu0 %v654_v47  ;;  %v657_v62 = vadd.f32 %v636_v58, %v635_v57  ;;  %1189 = vset.pattern.permute.xlu1 %v1280_v0  ;;  %v1478_v2 = vsub.s32 4, %v1425_v37  ;;  %v667_v4 = vrot.slane %v490_v1, %v1428_v38  ;;  %v671_v7 = vrot.slane %v490_v1, %v1431_v39 }
 0x12d   : > { %v648_v59 = vadd.f32 %v630_v53, %v629_v52  ;;  %v660_v63 = vadd.f32 %v638_v61, %v637_v60  ;;  %1190 = vset.pattern.permute.xlu0 %v1280_v0  ;;  %v1485_v8 = vsub.s32 2, %v1425_v37  ;;  %v1496_v14 = vsub.s32 5, %v1425_v37 }
 0x12e   : > { %v683_v9 = vrot.slane %v490_v1, %v1478_v2  ;;  %v1504_v19 = vsub.s32 6, %v1425_v37  ;;  %v1509_v22 = vsub.s32 3, %v1425_v37  ;;  %v1517_v27 = vsub.s32 7, %v1425_v37 }
 0x12f   : > { %646 = vadd.xlane.f32.xlu1 %v645_v56  ;;  %v675_v13 = vrot.slane %v490_v1, %v1485_v8  ;;  %v687_v18 = vrot.slane %v490_v1, %v1496_v14  ;;  %v745_v35 = vand.u32 127, %v476_v36 }
 0x130   : > { %649 = vadd.xlane.f32.xlu0 %v648_v59  ;;  %v691_v23 = vrot.slane %v490_v1, %v1504_v19  ;;  %v679_v26 = vrot.slane %v490_v1, %v1509_v22  ;;  %v695_v30 = vrot.slane %v490_v1, %v1517_v27 }
 0x131   : > { %v1526_v42 = vsub.s32 %v745_v35, %v1425_v37 }
 0x133   : > { %658 = vadd.xlane.f32.xlu1 %v657_v62 }
 0x134   : > { %661 = vadd.xlane.f32.xlu0 %v660_v63 }
 0x1b4   : > { %v653_v3 = vpop.xlane.xlu1 %652 }
 0x1b5   : > { %v641_v5 = vpop.xlane.xlu0 %640  ;;  %v1491_v12 = vadd.f32 %v683_v9, %v653_v3 }
 0x1b6   : > { %v1481_v6 = vadd.f32 %v667_v4, %v641_v5 }
 0x1b8   : > { %721 = vperm.xlu1 %1189, %v1481_v6   ;;  %v644_v10 = vpop.xlane.xlu1 %643 }
 0x1b9   : > { %v1489_v11 = vadd.f32 %v671_v7, %v644_v10  ;;  %v656_v17 = vpop.xlane.xlu0 %655 }
 0x1ba   : > { %v1506_v20 = vadd.f32 %v687_v18, %v656_v17 }
 0x1bb   : > { %724 = vperm.xlu0 %1190, %v1489_v11  }
 0x1bc   : > { %733 = vperm.xlu1 %1189, %v1491_v12   ;;  %v647_v15 = vpop.xlane.xlu1 %646 }
 0x1bd   : > { %v1499_v16 = vadd.f32 %v675_v13, %v647_v15  ;;  %v650_v24 = vpop.xlane.xlu0 %649 }
 0x1be   : > { %v707_v28 = vadd.f32 %v679_v26, %v650_v24 }
 0x1c0   : > { %727 = vperm.xlu1 %1189, %v1499_v16   ;;  %v659_v21 = vpop.xlane.xlu1 %658 }
 0x1c1   : > { %v1513_v25 = vadd.f32 %v691_v23, %v659_v21  ;;  %v662_v29 = vpop.xlane.xlu0 %661 }
 0x1c2   : > { %v1521_v31 = vadd.f32 %v695_v30, %v662_v29 }
 0x1c4   : > { %736 = vperm.xlu1 %1189, %v1506_v20  }
 0x1c8   : > { %739 = vperm.xlu1 %1189, %v1513_v25  }
 0x1cc   : > { %730 = vperm.xlu1 %1189, %v707_v28  }
 0x1d0   : > { %742 = vperm.xlu1 %1189, %v1521_v31  }
 0x237   : > { %v722_v32 = vpop.permute.xlu1 %721 }
 0x238   : > { %v749_v46 = vrot.slane %v722_v32, %v1526_v42 }
 0x23a   : > { %v725_v41 = vpop.permute.xlu0 %724 }
 0x23b   : > { %v734_v33 = vpop.permute.xlu1 %733  ;;  %v753_v44 = vrot.slane %v725_v41, %v1526_v42 }
 0x23c   : > { %v765_v49 = vrot.slane %v734_v33, %v1526_v42 }
 0x23d   : > { %v779_v48 = vsel %vm778_vm0, %v753_v44, %v749_v46 }
 0x23f   : > { %v728_v34 = vpop.permute.xlu1 %727 }
 0x240   : > { %v757_v45 = vrot.slane %v728_v34, %v1526_v42 }
 0x242   : > { %v781_v37 = vsel %vm780_vm1, %v757_v45, %v779_v48 }
 0x243   : > { %v737_v40 = vpop.permute.xlu1 %736 }
 0x244   : > { %v769_v50 = vrot.slane %v737_v40, %v1526_v42 }
 0x247   : > { %v740_v43 = vpop.permute.xlu1 %739 }
 0x248   : > { %v773_v52 = vrot.slane %v740_v43, %v1526_v42 }
 0x24b   : > { %v731_v47 = vpop.permute.xlu1 %730 }
 0x24c   : > { %v761_v36 = vrot.slane %v731_v47, %v1526_v42 }
 0x24e   : > { %v783_v51 = vsel %vm782_vm2, %v761_v36, %v781_v37 }
 0x24f   : > { %v785_v53 = vsel %vm784_vm3, %v765_v49, %v783_v51  ;;  %v743_v54 = vpop.permute.xlu1 %742 }
 0x250   : > { %v777_v55 = vrot.slane %v743_v54, %v1526_v42  ;;  %v787_v56 = vsel %vm786_vm4, %v769_v50, %v785_v53 }
 0x251   : > { %v789_v57 = vsel %vm788_vm5, %v773_v52, %v787_v56 }
 0x252   : > { %v791_v58 = vsel %vm790_vm6, %v777_v55, %v789_v57 }
 0x253   : > { %v794_v59 = vsel %vm793_vm7, %v791_v58, -inf }
 0x254   : > { %795 = vmax.xlane.f32.xlu1 %v794_v59 }
 0x2e1   : > { %v796_v60 = vpop.xlane.xlu1 %795 }
 0x2e2   : > { %v801_v61 = vrot.slane %v796_v60, %v1428_v38  ;;  %v805_v62 = vrot.slane %v796_v60, %v1431_v39  ;;  %v809_v63 = vrot.slane %v796_v60, %v1485_v8  ;;  %v813_v4 = vrot.slane %v796_v60, %v1509_v22 }
 0x2e3   : > { %v817_v9 = vrot.slane %v796_v60, %v1478_v2  ;;  %v821_v15 = vrot.slane %v796_v60, %v1496_v14  ;;  %v829_v24 = vrot.slane %v796_v60, %v1517_v27 }
 0x2e4   : > { %v838_v0 = vsub.f32 %v1481_v6, %v801_v61  ;;  %v839_v1 = vsub.f32 %v1489_v11, %v805_v62  ;;  %v840_v5 = vsub.f32 %v1499_v16, %v809_v63  ;;  %v841_v10 = vsub.f32 %v707_v28, %v813_v4 }
 0x2e5   : > { %v842_v17 = vsub.f32 %v1491_v12, %v817_v9  ;;  %v825_v11 = vrot.slane %v796_v60, %v1504_v19  ;;  %v843_v16 = vsub.f32 %v1506_v20, %v821_v15  ;;  %v845_v29 = vsub.f32 %v1521_v31, %v829_v24 }
 0x2e6   : > { %v846_v3 = vmul.f32 1.442695, %v838_v0  ;;  %v848_v7 = vmul.f32 1.442695, %v839_v1  ;;  %v850_v13 = vmul.f32 1.442695, %v840_v5 }
 0x2e7   : > { %v852_v6 = vmul.f32 1.442695, %v841_v10  ;;  %v854_v21 = vmul.f32 1.442695, %v842_v17  ;;  %v844_v12 = vsub.f32 %v1513_v25, %v825_v11  ;;  %v856_v26 = vmul.f32 1.442695, %v843_v16 }
 0x2e8   : > { %1239 = vpow2.f32 %v846_v3  ;;  %v860_v32 = vmul.f32 1.442695, %v845_v29 }
 0x2e9   : > { %1241 = vpow2.f32 %v848_v7  ;;  %v858_v20 = vmul.f32 1.442695, %v844_v12 }
 0x2ea   : > { %1243 = vpow2.f32 %v850_v13 }
 0x2eb   : > { %1245 = vpow2.f32 %v852_v6 }
 0x2ec   : > { %1247 = vpow2.f32 %v854_v21 }
 0x2ed   : > { %1249 = vpow2.f32 %v856_v26 }
 0x2ee   : > { %1251 = vpow2.f32 %v858_v20 }
 0x2ef   : > { %1253 = vpow2.f32 %v860_v32 }
 0x2f2   : > { %v1554_v18 = vpop.eup %1239 }
 0x2f3   : > { %871 = vperm.xlu0 %1190, %v1554_v18   ;;  %v1559_v23 = vpop.eup %1241 }
 0x2f4   : > { %v1564_v28 = vpop.eup %1243 }
 0x2f5   : > { %v1568_v30 = vpop.eup %1245 }
 0x2f6   : > { %v1571_v33 = vpop.eup %1247 }
 0x2f7   : > { %874 = vperm.xlu0 %1190, %v1559_v23   ;;  %v1574_v25 = vpop.eup %1249 }
 0x2f8   : > { %v1252_v34 = vpop.eup %1251 }
 0x2f9   : > { %v1577_v31 = vpop.eup %1253 }
 0x2fb   : > { %877 = vperm.xlu0 %1190, %v1564_v28  }
 0x2ff   : > { %880 = vperm.xlu0 %1190, %v1568_v30  }
 0x303   : > { %883 = vperm.xlu0 %1190, %v1571_v33  }
 0x307   : > { %886 = vperm.xlu0 %1190, %v1574_v25  }
 0x30b   : > { %889 = vperm.xlu0 %1190, %v1252_v34  }
 0x30f   : > { %892 = vperm.xlu0 %1190, %v1577_v31  }
 0x372   : > { %v872_v35 = vpop.permute.xlu0 %871 }
 0x373   : > { %v897_v48 = vrot.slane %v872_v35, %v1526_v42 }
 0x376   : > { %v875_v40 = vpop.permute.xlu0 %874 }
 0x377   : > { %v901_v46 = vrot.slane %v875_v40, %v1526_v42 }
 0x379   : > { %v926_v50 = vsel %vm778_vm0, %v901_v46, %v897_v48 }
 0x37a   : > { %v878_v41 = vpop.permute.xlu0 %877 }
 0x37b   : > { %v905_v47 = vrot.slane %v878_v41, %v1526_v42 }
 0x37d   : > { %v927_v52 = vsel %vm780_vm1, %v905_v47, %v926_v50 }
 0x37e   : > { %v881_v43 = vpop.permute.xlu0 %880 }
 0x37f   : > { %v909_v36 = vrot.slane %v881_v43, %v1526_v42 }
 0x381   : > { %v928_v54 = vsel %vm782_vm2, %v909_v36, %v927_v52 }
 0x382   : > { %v884_v44 = vpop.permute.xlu0 %883 }
 0x383   : > { %v913_v49 = vrot.slane %v884_v44, %v1526_v42 }
 0x385   : > { %v929_v55 = vsel %vm784_vm3, %v913_v49, %v928_v54 }
 0x386   : > { %v887_v45 = vpop.permute.xlu0 %886 }
 0x387   : > { %v917_v51 = vrot.slane %v887_v45, %v1526_v42 }
 0x389   : > { %v930_v57 = vsel %vm786_vm4, %v917_v51, %v929_v55 }
 0x38a   : > { %v890_v37 = vpop.permute.xlu0 %889 }
 0x38b   : > { %v921_v53 = vrot.slane %v890_v37, %v1526_v42 }
 0x38d   : > { %v931_v59 = vsel %vm788_vm5, %v921_v53, %v930_v57 }
 0x38e   : > { %v893_v56 = vpop.permute.xlu0 %892 }
 0x38f   : > { %v925_v58 = vrot.slane %v893_v56, %v1526_v42 }
 0x391   : > { %v932_v60 = vsel %vm790_vm6, %v925_v58, %v931_v59 }
 0x392   : > { %v934_v61 = vsel %vm793_vm7, %v932_v60, 0.0 }
 0x393   : > { %935 = vadd.xlane.f32.xlu1 %v934_v61 }
 0x420   : > { %v936_v62 = vpop.xlane.xlu1 %935 }
 0x421   : > { %v945_v63 = vrot.slane %v936_v62, %v1431_v39  ;;  %v941_v0 = vrot.slane %v936_v62, %v1428_v38  ;;  %v965_v1 = vrot.slane %v936_v62, %v1504_v19  ;;  %v949_v3 = vrot.slane %v936_v62, %v1485_v8 }
 0x422   : > { %v953_v4 = vrot.slane %v936_v62, %v1509_v22  ;;  %v957_v5 = vrot.slane %v936_v62, %v1478_v2  ;;  %v961_v38 = vrot.slane %v936_v62, %v1496_v14  ;;  %v969_v22 = vrot.slane %v936_v62, %v1517_v27 }
 0x423   : > { %1255 = vrcp.f32 %v945_v63 }
 0x424   : > { %1257 = vrcp.f32 %v941_v0 }
 0x425   : > { %1259 = vrcp.f32 %v965_v1 }
 0x426   : > { %1261 = vrcp.f32 %v949_v3 }
 0x427   : > { %1263 = vrcp.f32 %v953_v4 }
 0x428   : > { %1265 = vrcp.f32 %v957_v5 }
 0x429   : > { %1267 = vrcp.f32 %v961_v38 }
 0x42a   : > { %1269 = vrcp.f32 %v969_v22 }
 0x42d   : > { %v1256_v7 = vpop.eup %1255 }
 0x42e   : > { %v1258_v9 = vpop.eup %1257  ;;  %v981_v10 = vmul.f32 %v1256_v7, %v1559_v23 }
 0x42f   : > { %v1260_v39 = vpop.eup %1259  ;;  %v979_v19 = vmul.f32 %v1258_v9, %v1554_v18 }
 0x430   : > { %v1262_v8 = vpop.eup %1261  ;;  %1006 = vperm.xlu1 %1189, %v981_v10   ;;  %v991_v13 = vmul.f32 %v1260_v39, %v1252_v34 }
 0x431   : > { %1003 = vperm.xlu0 %1190, %v979_v19   ;;  %v983_v15 = vmul.f32 %v1262_v8, %v1564_v28  ;;  %v1264_v2 = vpop.eup %1263 }
 0x432   : > { %v985_v17 = vmul.f32 %v1264_v2, %v1568_v30  ;;  %v1266_v6 = vpop.eup %1265 }
 0x433   : > { %v987_v14 = vmul.f32 %v1266_v6, %v1571_v33  ;;  %v1268_v18 = vpop.eup %1267 }
 0x434   : > { %1021 = vperm.xlu1 %1189, %v991_v13   ;;  %v989_v11 = vmul.f32 %v1268_v18, %v1574_v25  ;;  %v1270_v16 = vpop.eup %1269 }
 0x435   : > { %1009 = vperm.xlu0 %1190, %v983_v15   ;;  %v993_v27 = vmul.f32 %v1270_v16, %v1577_v31 }
 0x439   : > { %1012 = vperm.xlu0 %1190, %v985_v17  }
 0x43d   : > { %1015 = vperm.xlu0 %1190, %v987_v14  }
 0x441   : > { %1018 = vperm.xlu0 %1190, %v989_v11  }
 0x445   : > { %1024 = vperm.xlu0 %1190, %v993_v27  }
 0x4af   : > { %v1007_v24 = vpop.permute.xlu1 %1006 }
 0x4b0   : > { %v1004_v21 = vpop.permute.xlu0 %1003  ;;  %v1033_v26 = vrot.slane %v1007_v24, %v1526_v42 }
 0x4b1   : > { %v1029_v28 = vrot.slane %v1004_v21, %v1526_v42 }
 0x4b3   : > { %v1058_v33 = vsel %vm778_vm0, %v1033_v26, %v1029_v28  ;;  %v1022_v31 = vpop.permute.xlu1 %1021 }
 0x4b4   : > { %v1010_v23 = vpop.permute.xlu0 %1009  ;;  %v1053_v44 = vrot.slane %v1022_v31, %v1526_v42 }
 0x4b5   : > { %v1037_v29 = vrot.slane %v1010_v23, %v1526_v42 }
 0x4b7   : > { %v1059_v25 = vsel %vm780_vm1, %v1037_v29, %v1058_v33 }
 0x4b8   : > { %v1013_v12 = vpop.permute.xlu0 %1012 }
 0x4b9   : > { %v1041_v30 = vrot.slane %v1013_v12, %v1526_v42 }
 0x4bb   : > { %v1060_v35 = vsel %vm782_vm2, %v1041_v30, %v1059_v25 }
 0x4bc   : > { %v1016_v20 = vpop.permute.xlu0 %1015 }
 0x4bd   : > { %v1045_v32 = vrot.slane %v1016_v20, %v1526_v42 }
 0x4bf   : > { %v1061_v41 = vsel %vm784_vm3, %v1045_v32, %v1060_v35 }
 0x4c0   : > { %v1019_v34 = vpop.permute.xlu0 %1018 }
 0x4c1   : > { %v1049_v40 = vrot.slane %v1019_v34, %v1526_v42 }
 0x4c3   : > { %v1062_v43 = vsel %vm786_vm4, %v1049_v40, %v1061_v41 }
 0x4c4   : > { %v1025_v45 = vpop.permute.xlu0 %1024  ;;  %v1063_v47 = vsel %vm788_vm5, %v1053_v44, %v1062_v43 }
 0x4c5   : > { %v1057_v46 = vrot.slane %v1025_v45, %v1526_v42 }
 0x4c7   : > { %v1064_v48 = vsel %vm790_vm6, %v1057_v46, %v1063_v47 }
 0x4c8   : > { %1066 = vst.msk [vmem:[%s220_s26] sm:$0xff] %vm793_vm7, %v1064_v48 }
 0x4c9 PF: > { %s14_s15 = sadd.s32 1, %s1277_s15  }
 0x4ca   : > { %p11_p5 = scmp.ge.s32.totalorder %s14_s15, 4  }
 0x4cc   :  { %13 = sbr.rel (!%p11_p5) target bundleno = 1 (0x1), region = 69 }

</bundles_post_ra>
